<compile_context>
chip_gen: v6e
topology: v6e:2x2x1
jax: 0.10.0
libtpu: 0.0.40
codegen_flags: <defaults>
</compile_context>

<pallas_src>
import math

import numpy as np
import jax
import jax.numpy as jnp
from jax.experimental import pallas as pl
from jax.experimental.pallas import tpu as pltpu


def _beam_classifier_kernel(x_ref, wr_ref, wi_ref, w1_ref, b1_ref,
                            w2_ref, b2_ref, w3_ref, b3_ref, out_ref):
    """Per-batch-tile fused forward pass.

      bf_real = x @ w_real        bf_imag = x @ w_imag      (TN, B)
      power   = bf_real^2 + bf_imag^2                        (ComputePower)
      h       = relu(power @ W1 + b1); h = relu(h @ W2 + b2)
      out     = h @ W3 + b3
    """
    x = x_ref[...]                                               # (TN, 2A)
    bf_real = jnp.dot(x, wr_ref[...], preferred_element_type=jnp.float32)
    bf_imag = jnp.dot(x, wi_ref[...], preferred_element_type=jnp.float32)

    # TODO(synk): noise_power > 0 branch (additive Gaussian noise via the
    # in-kernel PRNG) is not implemented; module default noise_power=0.0
    # makes the noise term exactly zero.

    power = bf_real * bf_real + bf_imag * bf_imag                # ComputePower
    # (post-power ReLU is a mathematical no-op and was removed)

    h = jnp.dot(power, w1_ref[...], preferred_element_type=jnp.float32) + b1_ref[...]
    h = jnp.maximum(h, 0.0)
    h = jnp.dot(h, w2_ref[...], preferred_element_type=jnp.float32) + b2_ref[...]
    h = jnp.maximum(h, 0.0)
    out_ref[...] = (jnp.dot(h, w3_ref[...], preferred_element_type=jnp.float32)
                    + b3_ref[...])


def _round_up(a, b):
    return (a + b - 1) // b * b


def beam_classifier(x, theta, w1, b1, w2, b2, w3, b3, *, block_rows=2048):
    """Beam_Classifier forward (trainable_codebook=True, noise_power=0).

    x:     (N, 2*n_antenna) float32, [real | imag]
    theta: (n_antenna, n_wide_beam)
    w1/b1, w2/b2, w3/b3: torch nn.Linear layout, weight (out, in), bias (out,)
    returns (N, n_narrow_beam) float32 (pre-softmax logits, as in the module).
    """
    n_batch = x.shape[0]
    n_antenna, n_wide = theta.shape
    n_narrow = w3.shape[0]
    inv_scale = 1.0 / math.sqrt(n_antenna)        # PhaseShifter scale=sqrt(n_antenna)

    # ---- Loop-invariant parameter plumbing (plain XLA, outside the kernel) ----
    r = jnp.cos(theta) * inv_scale                               # (A, B)
    i = jnp.sin(theta) * inv_scale
    w_real = jnp.concatenate([r, i], axis=0)                     # (2A, B)
    w_imag = jnp.concatenate([-i, r], axis=0)                    # (2A, B)
    w1t, w2t, w3t = jnp.transpose(w1), jnp.transpose(w2), jnp.transpose(w3)
    b1r, b2r, b3r = b1.reshape(1, -1), b2.reshape(1, -1), b3.reshape(1, -1)

    # ---- Batch tiling: TN rows per grid step (sublane-aligned, VMEM-bounded) ----
    tn = min(block_rows, _round_up(n_batch, 8))
    n_pad = _round_up(n_batch, tn)
    if n_pad != n_batch:
        x = jnp.pad(x, ((0, n_pad - n_batch), (0, 0)))
    grid = (n_pad // tn,)

    x_map = lambda b: (b, 0)          # streamed per tile
    const_map = lambda b: (0, 0)      # fetched once, VMEM-resident across steps

    flops = 2 * n_pad * (2 * (2 * n_antenna) * n_wide
                         + n_wide * 2 * n_wide
                         + 2 * n_wide * 3 * n_wide
                         + 3 * n_wide * n_narrow)
    bytes_accessed = 4 * (n_pad * (2 * n_antenna + n_narrow)
                          + 2 * (2 * n_antenna * n_wide)
                          + n_wide * 2 * n_wide + 2 * n_wide * 3 * n_wide
                          + 3 * n_wide * n_narrow
                          + 2 * n_wide + 3 * n_wide + n_narrow)

    out = pl.pallas_call(
        _beam_classifier_kernel,
        out_shape=jax.ShapeDtypeStruct((n_pad, n_narrow), jnp.float32),
        grid_spec=pltpu.PrefetchScalarGridSpec(
            num_scalar_prefetch=0,
            grid=grid,
            in_specs=[
                pl.BlockSpec((tn, 2 * n_antenna), x_map),           # x tile
                pl.BlockSpec((2 * n_antenna, n_wide), const_map),    # w_real
                pl.BlockSpec((2 * n_antenna, n_wide), const_map),    # w_imag
                pl.BlockSpec((n_wide, 2 * n_wide), const_map),       # W1^T
                pl.BlockSpec((1, 2 * n_wide), const_map),            # b1
                pl.BlockSpec((2 * n_wide, 3 * n_wide), const_map),   # W2^T
                pl.BlockSpec((1, 3 * n_wide), const_map),            # b2
                pl.BlockSpec((3 * n_wide, n_narrow), const_map),     # W3^T
                pl.BlockSpec((1, n_narrow), const_map),              # b3
            ],
            out_specs=pl.BlockSpec((tn, n_narrow), x_map),
        ),
        compiler_params=pltpu.CompilerParams(
            dimension_semantics=("parallel",)),
        cost_estimate=pl.CostEstimate(flops=flops, transcendentals=0,
                                      bytes_accessed=bytes_accessed),
    )(x, w_real, w_imag, w1t, b1r, w2t, b2r, w3t, b3r)

    return out[:n_batch]


def beam_classifier_reference(x, theta, w1, b1, w2, b2, w3, b3):
    """Pure-JAX transcription of the PyTorch forward (for verification)."""
    n_antenna, n_wide = theta.shape
    scale = math.sqrt(n_antenna)
    r = jnp.cos(theta) / scale
    i = jnp.sin(theta) / scale
    cb = jnp.concatenate(
        [jnp.concatenate([r, -i], axis=-1),
         jnp.concatenate([i, r], axis=-1)], axis=0)            # (2A, 2B)
    bf = x @ cb                                                # PhaseShifter
    power = bf[:, :n_wide] ** 2 + bf[:, n_wide:] ** 2          # ComputePower
    h = jax.nn.relu(power)
    h = jax.nn.relu(h @ w1.T + b1)
    h = jax.nn.relu(h @ w2.T + b2)
    return h @ w3.T + b3                                       # no softmax in forward


if __name__ == "__main__":
    # Small shapes consistent with the module.
    n_antenna, n_wide_beam, n_narrow_beam = 16, 8, 16
    batch = 4

    key = jax.random.PRNGKey(0)
    ks = jax.random.split(key, 8)

    # theta ~ U(0, 2*pi), shape (n_antenna, n_wide_beam)  [PhaseShifter init]
    theta = jax.random.uniform(ks[0], (n_antenna, n_wide_beam),
                               minval=0.0, maxval=2.0 * math.pi, dtype=jnp.float32)
    # Input: (batch, 2*n_antenna) = [real | imag]
    x = jax.random.normal(ks[1], (batch, 2 * n_antenna), jnp.float32)

    def linear_init(kw, kb, fan_in, fan_out):
        bound = 1.0 / math.sqrt(fan_in)            # torch nn.Linear default init range
        w = jax.random.uniform(kw, (fan_out, fan_in), minval=-bound, maxval=bound,
                               dtype=jnp.float32)
        b = jax.random.uniform(kb, (fan_out,), minval=-bound, maxval=bound,
                               dtype=jnp.float32)
        return w, b

    w1, b1 = linear_init(ks[2], ks[3], n_wide_beam, 2 * n_wide_beam)
    w2, b2 = linear_init(ks[4], ks[5], 2 * n_wide_beam, 3 * n_wide_beam)
    w3, b3 = linear_init(ks[6], ks[7], 3 * n_wide_beam, n_narrow_beam)

    out = beam_classifier(x, theta, w1, b1, w2, b2, w3, b3)
    out = jax.block_until_ready(out)

    ref = beam_classifier_reference(x, theta, w1, b1, w2, b2, w3, b3)
    np.testing.assert_allclose(np.asarray(out), np.asarray(ref), rtol=1e-5, atol=1e-5)

    print("KERNEL_OK")
</pallas_src>

<mosaic_0001>
module attributes {stable_mosaic.version = 11 : i64} {
  func.func @_beam_classifier_kernel(%arg0: i32, %arg1: memref<8x32xf32, #tpu.memory_space<vmem>>, %arg2: memref<32x8xf32, #tpu.memory_space<vmem>>, %arg3: memref<32x8xf32, #tpu.memory_space<vmem>>, %arg4: memref<8x16xf32, #tpu.memory_space<vmem>>, %arg5: memref<1x16xf32, #tpu.memory_space<vmem>>, %arg6: memref<16x24xf32, #tpu.memory_space<vmem>>, %arg7: memref<1x24xf32, #tpu.memory_space<vmem>>, %arg8: memref<24x16xf32, #tpu.memory_space<vmem>>, %arg9: memref<1x16xf32, #tpu.memory_space<vmem>>, %arg10: memref<8x16xf32, #tpu.memory_space<vmem>>) attributes {dimension_semantics = [#tpu.dimension_semantics<parallel>], iteration_bounds = array<i64: 1>, scalar_prefetch = 0 : i64, scratch_operands = 0 : i64, tpu.core_type = #tpu.core_type<tc>, window_params = [{transform_indices = @transform_0, window_bounds = array<i64: 8, 32>}, {pipeline_mode = #tpu.pipeline_mode<synchronous>, transform_indices = @transform_1, window_bounds = array<i64: 32, 8>}, {pipeline_mode = #tpu.pipeline_mode<synchronous>, transform_indices = @transform_2, window_bounds = array<i64: 32, 8>}, {pipeline_mode = #tpu.pipeline_mode<synchronous>, transform_indices = @transform_3, window_bounds = array<i64: 8, 16>}, {pipeline_mode = #tpu.pipeline_mode<synchronous>, transform_indices = @transform_4, window_bounds = array<i64: 1, 16>}, {pipeline_mode = #tpu.pipeline_mode<synchronous>, transform_indices = @transform_5, window_bounds = array<i64: 16, 24>}, {pipeline_mode = #tpu.pipeline_mode<synchronous>, transform_indices = @transform_6, window_bounds = array<i64: 1, 24>}, {pipeline_mode = #tpu.pipeline_mode<synchronous>, transform_indices = @transform_7, window_bounds = array<i64: 24, 16>}, {pipeline_mode = #tpu.pipeline_mode<synchronous>, transform_indices = @transform_8, window_bounds = array<i64: 1, 16>}, {transform_indices = @transform_9, window_bounds = array<i64: 8, 16>}]} {
    %c0 = arith.constant 0 : index
    %c0_0 = arith.constant 0 : index
    %0 = vector.load %arg1[%c0, %c0_0] : memref<8x32xf32, #tpu.memory_space<vmem>>, vector<8x32xf32>
    %c0_1 = arith.constant 0 : index
    %c0_2 = arith.constant 0 : index
    %1 = vector.load %arg2[%c0_1, %c0_2] : memref<32x8xf32, #tpu.memory_space<vmem>>, vector<32x8xf32>
    %cst = arith.constant dense<0.000000e+00> : vector<8x8xf32>
    %2 = tpu.matmul %0, %1, %cst {dimension_numbers = #tpu.dot_dimension_numbers<[1], [0], [0], [1], [0, 0, 1, 1], [], []>} : vector<8x32xf32>, vector<32x8xf32>, vector<8x8xf32> -> vector<8x8xf32>
    %c0_3 = arith.constant 0 : index
    %c0_4 = arith.constant 0 : index
    %3 = vector.load %arg3[%c0_3, %c0_4] : memref<32x8xf32, #tpu.memory_space<vmem>>, vector<32x8xf32>
    %cst_5 = arith.constant dense<0.000000e+00> : vector<8x8xf32>
    %4 = tpu.matmul %0, %3, %cst_5 {dimension_numbers = #tpu.dot_dimension_numbers<[1], [0], [0], [1], [0, 0, 1, 1], [], []>} : vector<8x32xf32>, vector<32x8xf32>, vector<8x8xf32> -> vector<8x8xf32>
    %5 = arith.mulf %2, %2 : vector<8x8xf32>
    %6 = arith.mulf %4, %4 : vector<8x8xf32>
    %7 = arith.addf %5, %6 : vector<8x8xf32>
    %c0_6 = arith.constant 0 : index
    %c0_7 = arith.constant 0 : index
    %8 = vector.load %arg4[%c0_6, %c0_7] : memref<8x16xf32, #tpu.memory_space<vmem>>, vector<8x16xf32>
    %cst_8 = arith.constant dense<0.000000e+00> : vector<8x16xf32>
    %9 = tpu.matmul %7, %8, %cst_8 {dimension_numbers = #tpu.dot_dimension_numbers<[1], [0], [0], [1], [0, 0, 1, 1], [], []>} : vector<8x8xf32>, vector<8x16xf32>, vector<8x16xf32> -> vector<8x16xf32>
    %c0_9 = arith.constant 0 : index
    %c0_10 = arith.constant 0 : index
    %10 = vector.load %arg5[%c0_9, %c0_10] : memref<1x16xf32, #tpu.memory_space<vmem>>, vector<1x16xf32>
    %11 = vector.broadcast %10 : vector<1x16xf32> to vector<8x16xf32>
    %12 = arith.addf %9, %11 : vector<8x16xf32>
    %cst_11 = arith.constant 0.000000e+00 : f32
    %13 = vector.broadcast %cst_11 : f32 to vector<8x16xf32>
    %14 = arith.maximumf %12, %13 : vector<8x16xf32>
    %c0_12 = arith.constant 0 : index
    %c0_13 = arith.constant 0 : index
    %15 = vector.load %arg6[%c0_12, %c0_13] : memref<16x24xf32, #tpu.memory_space<vmem>>, vector<16x24xf32>
    %cst_14 = arith.constant dense<0.000000e+00> : vector<8x24xf32>
    %16 = tpu.matmul %14, %15, %cst_14 {dimension_numbers = #tpu.dot_dimension_numbers<[1], [0], [0], [1], [0, 0, 1, 1], [], []>} : vector<8x16xf32>, vector<16x24xf32>, vector<8x24xf32> -> vector<8x24xf32>
    %c0_15 = arith.constant 0 : index
    %c0_16 = arith.constant 0 : index
    %17 = vector.load %arg7[%c0_15, %c0_16] : memref<1x24xf32, #tpu.memory_space<vmem>>, vector<1x24xf32>
    %18 = vector.broadcast %17 : vector<1x24xf32> to vector<8x24xf32>
    %19 = arith.addf %16, %18 : vector<8x24xf32>
    %cst_17 = arith.constant 0.000000e+00 : f32
    %20 = vector.broadcast %cst_17 : f32 to vector<8x24xf32>
    %21 = arith.maximumf %19, %20 : vector<8x24xf32>
    %c0_18 = arith.constant 0 : index
    %c0_19 = arith.constant 0 : index
    %22 = vector.load %arg8[%c0_18, %c0_19] : memref<24x16xf32, #tpu.memory_space<vmem>>, vector<24x16xf32>
    %cst_20 = arith.constant dense<0.000000e+00> : vector<8x16xf32>
    %23 = tpu.matmul %21, %22, %cst_20 {dimension_numbers = #tpu.dot_dimension_numbers<[1], [0], [0], [1], [0, 0, 1, 1], [], []>} : vector<8x24xf32>, vector<24x16xf32>, vector<8x16xf32> -> vector<8x16xf32>
    %c0_21 = arith.constant 0 : index
    %c0_22 = arith.constant 0 : index
    %24 = vector.load %arg9[%c0_21, %c0_22] : memref<1x16xf32, #tpu.memory_space<vmem>>, vector<1x16xf32>
    %25 = vector.broadcast %24 : vector<1x16xf32> to vector<8x16xf32>
    %26 = arith.addf %23, %25 : vector<8x16xf32>
    %c0_23 = arith.constant 0 : index
    %c0_24 = arith.constant 0 : index
    %27 = vector.load %arg10[%c0_23, %c0_24] : memref<8x16xf32, #tpu.memory_space<vmem>>, vector<8x16xf32>
    tpu.vector_store %arg10[%c0_23, %c0_24], %26 {strides = array<i32>} : memref<8x16xf32, #tpu.memory_space<vmem>>, vector<8x16xf32>,
    return
  }
  func.func @transform_0(%arg0: i32) -> (i32, i32) {
    %c0_i32 = arith.constant 0 : i32
    %c0_i32_0 = arith.constant 0 : i32
    return %arg0, %c0_i32 : i32, i32
  }
  func.func @transform_1(%arg0: i32) -> (i32, i32) {
    %c0_i32 = arith.constant 0 : i32
    %c0_i32_0 = arith.constant 0 : i32
    %c0_i32_1 = arith.constant 0 : i32
    return %c0_i32, %c0_i32_0 : i32, i32
  }
  func.func @transform_2(%arg0: i32) -> (i32, i32) {
    %c0_i32 = arith.constant 0 : i32
    %c0_i32_0 = arith.constant 0 : i32
    %c0_i32_1 = arith.constant 0 : i32
    return %c0_i32, %c0_i32_0 : i32, i32
  }
  func.func @transform_3(%arg0: i32) -> (i32, i32) {
    %c0_i32 = arith.constant 0 : i32
    %c0_i32_0 = arith.constant 0 : i32
    %c0_i32_1 = arith.constant 0 : i32
    return %c0_i32, %c0_i32_0 : i32, i32
  }
  func.func @transform_4(%arg0: i32) -> (i32, i32) {
    %c0_i32 = arith.constant 0 : i32
    %c0_i32_0 = arith.constant 0 : i32
    %c0_i32_1 = arith.constant 0 : i32
    return %c0_i32, %c0_i32_0 : i32, i32
  }
  func.func @transform_5(%arg0: i32) -> (i32, i32) {
    %c0_i32 = arith.constant 0 : i32
    %c0_i32_0 = arith.constant 0 : i32
    %c0_i32_1 = arith.constant 0 : i32
    return %c0_i32, %c0_i32_0 : i32, i32
  }
  func.func @transform_6(%arg0: i32) -> (i32, i32) {
    %c0_i32 = arith.constant 0 : i32
    %c0_i32_0 = arith.constant 0 : i32
    %c0_i32_1 = arith.constant 0 : i32
    return %c0_i32, %c0_i32_0 : i32, i32
  }
  func.func @transform_7(%arg0: i32) -> (i32, i32) {
    %c0_i32 = arith.constant 0 : i32
    %c0_i32_0 = arith.constant 0 : i32
    %c0_i32_1 = arith.constant 0 : i32
    return %c0_i32, %c0_i32_0 : i32, i32
  }
  func.func @transform_8(%arg0: i32) -> (i32, i32) {
    %c0_i32 = arith.constant 0 : i32
    %c0_i32_0 = arith.constant 0 : i32
    %c0_i32_1 = arith.constant 0 : i32
    return %c0_i32, %c0_i32_0 : i32, i32
  }
  func.func @transform_9(%arg0: i32) -> (i32, i32) {
    %c0_i32 = arith.constant 0 : i32
    %c0_i32_0 = arith.constant 0 : i32
    return %arg0, %c0_i32 : i32, i32
  }
}

</mosaic_0001>

<bundles_post_ra>
// kernel: tpu_custom_call.1
= control target key start
LH: loop header
LB: loop body
LE: loop exit
PB: predicated region body
PF: predicated region fallthrough
CT: control target
= control target key end

     0   :  { %v550_v2 = vmov 0.0   ;;  %s686_s0 = inlined_call_operand.vmem [shape: f32[8,32], index: 0, kind: input, shape index: {}]   ;;  %s687_s1 = inlined_call_operand.vmem [shape: f32[32,8], index: 1, kind: input, shape index: {}]   ;;  %s688_s2 = inlined_call_operand.vmem [shape: f32[32,8], index: 2, kind: input, shape index: {}]   ;;  %s689_s3 = inlined_call_operand.vmem [shape: f32[8,16], index: 3, kind: input, shape index: {}]   ;;  %s690_s4 = inlined_call_operand.vmem [shape: f32[1,16], index: 4, kind: input, shape index: {}]   ;;  %s691_s5 = inlined_call_operand.vmem [shape: f32[16,24], index: 5, kind: input, shape index: {}]   ;;  %s692_s6 = inlined_call_operand.vmem [shape: f32[1,24], index: 6, kind: input, shape index: {}]   ;;  %s693_s7 = inlined_call_operand.vmem [shape: f32[24,16], index: 7, kind: input, shape index: {}]   ;;  %s694_s8 = inlined_call_operand.vmem [shape: f32[1,16], index: 8, kind: input, shape index: {}]   ;;  %s695_s9 = inlined_call_operand.hbm [shape: f32[8,16], index: 9, kind: output, shape index: {}]  }
   0x1   :  { %v37_v0 = vld [vmem:[%s687_s1 + $0x18] sm:$0xff]  ;;  %482 = vmatprep.subr.mxu0 %v550_v2  ;;  %493 = vmatprep.subr.mxu1 %v550_v2  ;;  %v36_v3 = vld [vmem:[%s687_s1 + $0x10] sm:$0xff]  ;;  %v35_v5 = vld [vmem:[%s687_s1 + $0x8] sm:$0xff] }
   0x2   :  { %v115_v1 = vld [vmem:[%s688_s2 + $0x18] sm:$0xff]  ;;  %v114_v4 = vld [vmem:[%s688_s2 + $0x10] sm:$0xff]  ;;  %483 = vmatpush3.msra.mxu0 %v37_v0  ;;  %v113_v6 = vld [vmem:[%s688_s2 + $0x8] sm:$0xff] }
   0x3   :  { %494 = vmatpush3.msra.mxu1 %v115_v1  ;;  %484 = vmatprep.subr.mxu0 %v550_v2 }
   0x4   :  { %495 = vmatprep.subr.mxu1 %v550_v2 }
   0x5   :  { %14 = vsyncpa [#allocation3], 0  ;;  %485 = vmatpush3.msra.mxu0 %v36_v3  ;;  %496 = vmatpush3.msra.mxu1 %v114_v4  ;;  %v34_v7 = vld [vmem:[%s687_s1] sm:$0xff]  ;;  %vm38_vm0 = vcmask 261120   ;;  %vm551_vm1 = vmmov 0   ;;  %vm197_vm2 = vcmask 64512  }
   0x6   :  { %486 = vmatprep.subr.mxu0 %v550_v2  ;;  %497 = vmatprep.subr.mxu1 %v550_v2  ;;  %v112_v8 = vld [vmem:[%s688_s2] sm:$0xff]  ;;  %v273_v18 = vld [vmem:[%s691_s5 + $0x8] sm:$0xff]  ;;  %vm281_vm3 = vcmask 130048   ;;  %v358_v25 = vld [vmem:[%s693_s7 + $0x10] sm:$0xff]  ;;  %vm366_vm4 = vcmask 195584   ;;  %s552_s18 = smov [#allocation2]  }
   0x7   :  { %487 = vmatpush3.msra.mxu0 %v35_v5  ;;  %498 = vmatpush3.msra.mxu1 %v113_v6  ;;  %v33_v9 = vld [vmem:[%s686_s0] sm:$0xff]  ;;  %v357_v26 = vld [vmem:[%s693_s7 + $0x8] sm:$0xff]  ;;  %s447_s19 = sshll.u32 %s552_s18, 4  ;;  %s448_s19 = int_to_ptr.vmem [resolvable:$true] %s447_s19 }
   0x8   :  { %488 = vmatprep.subr.mxu0 %v550_v2  ;;  %499 = vmatprep.subr.mxu1 %v550_v2  ;;  %v189_v10 = vld [vmem:[%s689_s3] sm:$0xff]  ;;  %p533_p1 = scmp.lt.s32.totalorder %s448_s19, %s448_s19 }
   0x9   :  { %489 = vmatpush3.msra.mxu0 %v34_v7  ;;  %490 = vmatprep.mubr.msk.f32.mxu0 %vm551_vm1, %v550_v2  ;;  %v272_v19 = vld [vmem:[%s691_s5] sm:$0xff] }
   0xa   :  { %500 = vmatpush3.msra.mxu1 %v112_v8  ;;  %501 = vmatprep.mubr.msk.f32.mxu1 %vm551_vm1, %v550_v2  ;;  %v457_v20 = vld [vmem:[%s690_s4] ss:$0 sm:$0xff] }
   0xb   :  { %491 = vmatmul.mubr.msk.f32.vlgmr.msra.gmra.mxu0 %vm38_vm0, %v33_v9  ;;  %502 = vmatmul.mubr.msk.f32.vlgmr.msra.gmra.mxu1 %vm38_vm0, %v33_v9  ;;  %v356_v27 = vld [vmem:[%s693_s7] sm:$0xff]  ;;  %s528_s7 = scalar_lea.vmem %s448_s19, 128 }
   0xc   :  { %504 = vmatprep.subr.mxu1 %v550_v2  ;;  %506 = vmatprep.mubr.msk.f32.mxu1 %vm551_vm1, %v550_v2  ;;  %v459_v28 = vld [vmem:[%s692_s6] ss:$0 sm:$0xff]  ;;  %p529_p0 = scmp.ne.s32.totalorder %s448_s19, %s528_s7  ;;  %p534_p2 = scmp.lt.s32.totalorder %s528_s7, %s528_s7 }
   0xd   :  { %516 = vmatprep.subr.mxu0 %v550_v2  ;;  %522 = vmatprep.mubr.msk.f32.mxu0 %vm551_vm1, %v550_v2  ;;  %v461_v33 = vld [vmem:[%s694_s8] ss:$0 sm:$0xff] }
   0xe   :  { %505 = vmatpush3.msra.mxu1 %v189_v10  ;;  %517 = vmatpush3.msra.mxu0 %v358_v25  ;;  %p535_p3 = por %p534_p2, %p533_p1 }
   0xf   :  { %509 = vmatprep.subr.mxu1 %v550_v2  ;;  %518 = vmatprep.subr.mxu0 %v550_v2 }
  0x10   :  { %519 = vmatpush3.msra.mxu0 %v357_v26  ;;  %p536_p4 = pnand %p535_p3, %p529_p0 }
  0x11   :  { %520 = vmatprep.subr.mxu0 %v550_v2 }
  0x12   :  { %521 = vmatpush3.msra.mxu0 %v356_v27 }
  0xcb   :  { %v108_v11 = vpop.f32.mrf.mxu0  ;;  %v182_v12 = vpop.f32.mrf.mxu1 }
  0xcc   :  { %v186_v13 = vmul.f32 %v108_v11, %v108_v11  ;;  %v187_v14 = vmul.f32 %v182_v12, %v182_v12 }
  0xcd   :  { %v492_v15 = vpop.f32.mrf.mxu0  ;;  %v503_v16 = vpop.f32.mrf.mxu1 }
  0xce   :  { %v188_v17 = vadd.f32 %v187_v14, %v186_v13 }
  0xd0   :  { %507 = vmatmul.mubr.msk.f32.vlgmr.msra.gmra.mxu1 %vm197_vm2, %v188_v17 }
  0xd1   :  { %513 = vmatprep.mubr.msk.f32.mxu1 %vm551_vm1, %v550_v2  ;;  %510 = vmatpush3.msra.mxu1 %v273_v18 }
  0xd2   :  { %511 = vmatprep.subr.mxu1 %v550_v2 }
  0xd3   :  { %512 = vmatpush3.msra.mxu1 %v272_v19 }
 0x190   :  { %v267_v21 = vpop.f32.mrf.mxu1 }
 0x191   :  { %v268_v22 = vadd.f32 %v457_v20, %v267_v21 }
 0x192   :  { %v508_v23 = vpop.f32.mrf.mxu1 }
 0x193   :  { %v271_v24 = vmax.f32 %v268_v22, 0.0 }
 0x195   :  { %514 = vmatmul.mubr.msk.f32.vlgmr.msra.gmra.mxu1 %vm281_vm3, %v271_v24 }
 0x255   :  { %v351_v29 = vpop.f32.mrf.mxu1 }
 0x256   :  { %v352_v30 = vadd.f32 %v459_v28, %v351_v29 }
 0x257   :  { %v515_v31 = vpop.f32.mrf.mxu1 }
 0x258   :  { %v355_v32 = vmax.f32 %v352_v30, 0.0 }
 0x25a   :  { %523 = vmatmul.mubr.msk.f32.vlgmr.msra.gmra.mxu0 %vm366_vm4, %v355_v32 }
 0x31a   :  { %v436_v34 = vpop.f32.mrf.mxu0 }
 0x31b   :  { %v437_v35 = vadd.f32 %v461_v33, %v436_v34 }
 0x31c   :  { %v524_v36 = vpop.f32.mrf.mxu0 }
 0x31d   :  { %440 = vst.msk [vmem:[#allocation2] sm:$0xff] %vm281_vm3, %v437_v35 }
 0x31e   :  { %539 = shalt.err (!%p536_p4)
}
 0x31f   :  { %450 = dma.vmem_to_hbm [thread:$0]  %s448_s19, 128, %s695_s9, [#allocation3]  }
 0x320   :  { %548 = dma.done.wait [#allocation3], 128  }
 0x321   :  { %549 = vsyncadd [#allocation3], 4294967168 }
 0x322   :  { %454 = vsyncpa [#allocation3], 1 }

</bundles_post_ra>
